<compile_context>
chip_gen: v6e
topology: v6e:2x2x1
jax: 0.10.0
libtpu: 0.0.40
codegen_flags: <defaults>
</compile_context>

<pallas_src>
import jax
import jax.numpy as jnp
from jax import lax
from jax.experimental import pallas as pl
from jax.experimental.pallas import tpu as pltpu


def _bert_embed_kernel(tok_ids_smem,   # SMEM  [B, S] int32   (scalar prefetch)
                       seg_ids_ref,    # VMEM  [TSEQ, 1] int32
                       pos_ref,        # VMEM  [TSEQ, E]
                       seg_tab_ref,    # VMEM  [NSEG, E]
                       tok_tab_hbm,    # HBM   [V, E]          (pl.ANY)
                       out_ref,        # VMEM  [TSEQ, E]
                       tok_buf,        # VMEM scratch [2*CHUNK, E] (double buffer)
                       sem):           # DMA semaphores (2,)   (one per slot)
    st = pl.program_id(0)               # sequence super-tile index
    b = pl.program_id(1)                # batch index

    tseq, emb = out_ref.shape
    chunk = tok_buf.shape[0] // 2
    n_chunks = tseq // chunk
    vocab = tok_tab_hbm.shape[0]
    nseg = seg_tab_ref.shape[0]
    seq_base = st * tseq

    # DMA-descriptor issue unroll factor (largest power of two <= 8 dividing chunk).
    unroll = 8
    while chunk % unroll:
        unroll //= 2

    def issue_chunk(c, slot):
        """Start per-row HBM->VMEM gathers for sub-chunk c into buffer slot."""
        buf_base = slot * chunk
        seq_off = seq_base + c * chunk

        def issue_group(g, carry):
            r0 = pl.multiple_of(g * unroll, unroll)
            for u in range(unroll):                       # static unroll
                r = r0 + u
                tid = tok_ids_smem[b, seq_off + r]
                # nn.Embedding would raise on OOB ids; clamp to avoid an OOB DMA.
                tid = jnp.minimum(jnp.maximum(tid, 0), vocab - 1)
                pltpu.make_async_copy(
                    tok_tab_hbm.at[pl.ds(tid, 1)],
                    tok_buf.at[pl.ds(buf_base + r, 1)],
                    sem.at[slot],
                ).start()
            return carry

        lax.fori_loop(0, chunk // unroll, issue_group, 0)

    def wait_chunk(slot):
        # Aggregate wait: all `chunk` row copies of this slot signal the same
        # semaphore; one descriptor spanning the whole slot waits for the
        # combined transfer size.  The HBM src ref is a dummy (only size matters).
        buf_base = slot * chunk
        pltpu.make_async_copy(
            tok_tab_hbm.at[pl.ds(0, chunk)],
            tok_buf.at[pl.ds(buf_base, chunk)],
            sem.at[slot],
        ).wait()

    # Hoist the tiny segment table (and its rows) out of the chunk loop.
    seg_tab = seg_tab_ref[...].astype(jnp.float32)           # (NSEG, E)
    if nseg == 2:
        seg_row0 = seg_tab[0:1, :]                            # (1, E)
        seg_row1 = seg_tab[1:2, :]                            # (1, E)

    # Prime the pipeline: gather chunk 0 into slot 0.
    issue_chunk(0, 0)

    @pl.loop(0, n_chunks)
    def _(c):
        slot = c & 1

        # Prefetch chunk c+1 while chunk c's DMAs complete / compute runs.
        @pl.when(c + 1 < n_chunks)
        def _():
            issue_chunk(c + 1, 1 - slot)

        wait_chunk(slot)

        row0 = pl.multiple_of(c * chunk, chunk)
        rows = pl.ds(row0, chunk)
        buf0 = pl.multiple_of(slot * chunk, chunk)

        tok = tok_buf[pl.ds(buf0, chunk), :].astype(jnp.float32)   # (chunk, E)
        pos = pos_ref[rows, :].astype(jnp.float32)                 # (chunk, E)
        acc = tok + pos

        seg_ids = seg_ids_ref[rows, :]                             # (chunk, 1) int32
        if nseg == 2:
            # Single vectorized select between the two resident table rows.
            acc = acc + jnp.where(seg_ids > 0, seg_row1, seg_row0)
        else:
            for n in range(nseg):                                  # static, NSEG tiny
                acc = acc + (seg_ids == n).astype(jnp.float32) * seg_tab[n:n + 1, :]

        # Dropout: eval-mode identity.
        out_ref[rows, :] = acc.astype(out_ref.dtype)


def _pick_tile(n, cap):
    """Largest divisor of n that is <= cap and a multiple of 8; falls back to n."""
    for t in range(min(n, cap), 0, -1):
        if n % t == 0 and t % 8 == 0:
            return t
    return n


def bert_embedding(seq, seg, token_table, segment_table, pos_table,
                   *, seq_tile=None, gather_chunk=None):
    """seq, seg: int [B, S].  Returns [B, S, E] = tok(seq) + seg(seg) + pos(arange(S))."""
    B, S = seq.shape
    V, E = token_table.shape
    NSEG = segment_table.shape[0]
    MAXLEN = pos_table.shape[0]
    assert S <= MAXLEN, "sequence longer than position table"

    # Sequence super-tile handled per grid step (<=512), and the gather
    # sub-chunk pipelined inside the kernel body (<=64).
    tseq = seq_tile if seq_tile is not None else _pick_tile(S, 512)
    assert S % tseq == 0
    assert tseq == S or tseq % 8 == 0, "seq tile must be a multiple of 8 or the full seq"
    chunk = gather_chunk if gather_chunk is not None else _pick_tile(tseq, 64)
    assert tseq % chunk == 0
    assert V >= chunk, "vocab must be >= gather chunk (aggregate-wait descriptor)"

    tok_ids = seq.astype(jnp.int32)                 # [B, S] -> SMEM scalar prefetch
    seg_ids = seg.astype(jnp.int32)[..., None]      # [B, S, 1] -> VMEM id tiles

    # Seq outer, batch inner: the pos-table block index is constant over the
    # inner batch axis, so Pallas skips re-fetching it for every batch row.
    grid = (S // tseq, B)

    out = pl.pallas_call(
        _bert_embed_kernel,
        out_shape=jax.ShapeDtypeStruct((B, S, E), token_table.dtype),
        grid_spec=pltpu.PrefetchScalarGridSpec(
            num_scalar_prefetch=1,                  # token ids -> SMEM
            grid=grid,
            in_specs=[
                pl.BlockSpec((None, tseq, 1), lambda s, b, tids: (b, s, 0)),  # seg ids
                pl.BlockSpec((tseq, E), lambda s, b, tids: (s, 0)),           # pos rows
                pl.BlockSpec((NSEG, E), lambda s, b, tids: (0, 0)),           # seg table (tiny, resident)
                pl.BlockSpec(memory_space=pl.ANY),                            # token table stays in HBM
            ],
            out_specs=pl.BlockSpec((None, tseq, E), lambda s, b, tids: (b, s, 0)),
            scratch_shapes=[
                pltpu.VMEM((2 * chunk, E), token_table.dtype),  # double-buffered gathered rows
                pltpu.SemaphoreType.DMA((2,)),                  # one sem per pipeline slot
            ],
        ),
        compiler_params=pltpu.CompilerParams(
            dimension_semantics=("parallel", "parallel")),
    )(tok_ids, seg_ids, pos_table, segment_table, token_table)

    return out


def reference(seq, seg, token_table, segment_table, pos_table):
    S = seq.shape[1]
    tok = token_table[seq]                        # [B, S, E]
    sgm = segment_table[seg]                      # [B, S, E]
    pos = pos_table[jnp.arange(S)][None, :, :]    # [1, S, E]
    return tok + sgm + pos


if __name__ == "__main__":
    # Module hyper-params (small, consistent with the PyTorch module).
    # embed_dim=128 keeps the output tile lane-dense (real BERT E=768 also is).
    vocab_size, n_segments, max_len, embed_dim, dropout = 64, 2, 16, 128, 0.1
    B, S = 2, 8

    key = jax.random.PRNGKey(0)
    k_tok, k_seg, k_pos, k_ids, k_sg = jax.random.split(key, 5)

    # Deterministic parameter init (nn.Embedding default: N(0, 1)).
    token_table = jax.random.normal(k_tok, (vocab_size, embed_dim), jnp.float32)
    segment_table = jax.random.normal(k_seg, (n_segments, embed_dim), jnp.float32)
    pos_table = jax.random.normal(k_pos, (max_len, embed_dim), jnp.float32)

    seq = jax.random.randint(k_ids, (B, S), 0, vocab_size, dtype=jnp.int32)
    seg = jax.random.randint(k_sg, (B, S), 0, n_segments, dtype=jnp.int32)

    out = bert_embedding(seq, seg, token_table, segment_table, pos_table)
    out = jax.block_until_ready(out)

    ref = reference(seq, seg, token_table, segment_table, pos_table)
    assert out.shape == (B, S, embed_dim)
    assert jnp.allclose(out, ref, atol=1e-5, rtol=1e-5), "mismatch vs reference"

    print("KERNEL_OK")
</pallas_src>

<mosaic_0001>
module attributes {stable_mosaic.version = 11 : i64} {
  func.func @_bert_embed_kernel(%arg0: i32, %arg1: i32, %arg2: memref<2x8xi32, #tpu.memory_space<smem>>, %arg3: memref<1x8x1xi32, #tpu.memory_space<vmem>>, %arg4: memref<8x128xf32, #tpu.memory_space<vmem>>, %arg5: memref<2x128xf32, #tpu.memory_space<vmem>>, %arg6: memref<64x128xf32, #tpu.memory_space<any>>, %arg7: memref<1x8x128xf32, #tpu.memory_space<vmem>>, %arg8: memref<16x128xf32, #tpu.memory_space<vmem>>, %arg9: memref<2x!tpu.dma_semaphore, #tpu.memory_space<semaphore_mem>>) attributes {dimension_semantics = [#tpu.dimension_semantics<parallel>, #tpu.dimension_semantics<parallel>], iteration_bounds = array<i64: 1, 2>, scalar_prefetch = 1 : i64, scratch_operands = 2 : i64, tpu.core_type = #tpu.core_type<tc>, window_params = [{transform_indices = @transform_0, window_bounds = array<i64: 1, 8, 1>}, {transform_indices = @transform_1, window_bounds = array<i64: 8, 128>}, {pipeline_mode = #tpu.pipeline_mode<synchronous>, transform_indices = @transform_2, window_bounds = array<i64: 2, 128>}, {}, {transform_indices = @transform_4, window_bounds = array<i64: 1, 8, 128>}]} {
    %c8_i32 = arith.constant 8 : i32
    %0 = arith.muli %arg0, %c8_i32 : i32
    %c0 = arith.constant 0 : index
    %c0_0 = arith.constant 0 : index
    %1 = vector.load %arg5[%c0, %c0_0] : memref<2x128xf32, #tpu.memory_space<vmem>>, vector<2x128xf32>
    %2 = vector.extract_strided_slice %1 {offsets = [0, 0], sizes = [1, 128], strides = [1, 1]} : vector<2x128xf32> to vector<1x128xf32>
    %3 = vector.extract_strided_slice %1 {offsets = [1, 0], sizes = [1, 128], strides = [1, 1]} : vector<2x128xf32> to vector<1x128xf32>
    %c0_i32 = arith.constant 0 : i32
    %4 = arith.addi %0, %c0_i32 : i32
    %c0_i32_1 = arith.constant 0 : i32
    %c8_i32_2 = arith.constant 8 : i32
    %5 = arith.muli %c0_i32_1, %c8_i32_2 : i32
    %6 = tpu.assume_multiple %5, 8 : i32
    %c0_i32_3 = arith.constant 0 : i32
    %7 = arith.addi %6, %c0_i32_3 : i32
    %8 = arith.addi %4, %7 : i32
    %9 = arith.index_cast %arg1 : i32 to index
    %10 = arith.index_cast %8 : i32 to index
    %11 = memref.load %arg2[%9, %10] : memref<2x8xi32, #tpu.memory_space<smem>>
    %c0_i32_4 = arith.constant 0 : i32
    %12 = arith.maxsi %11, %c0_i32_4 : i32
    %c63_i32 = arith.constant 63 : i32
    %13 = arith.minsi %12, %c63_i32 : i32
    %c0_i32_5 = arith.constant 0 : i32
    %14 = arith.addi %c0_i32_5, %7 : i32
    %c0_i32_6 = arith.constant 0 : i32
    %c0_i32_7 = arith.constant 0 : i32
    %15 = tpu.memref_slice %arg6[%13, %c0_i32_7] : memref<64x128xf32, #tpu.memory_space<any>> -> memref<1x128xf32, #tpu.memory_space<any>>
    %c0_i32_8 = arith.constant 0 : i32
    %16 = tpu.memref_slice %arg8[%14, %c0_i32_8] : memref<16x128xf32, #tpu.memory_space<vmem>> -> memref<1x128xf32, #tpu.memory_space<vmem>>
    %17 = tpu.memref_slice %arg9[%c0_i32_6] : memref<2x!tpu.dma_semaphore, #tpu.memory_space<semaphore_mem>> -> memref<1x!tpu.dma_semaphore, #tpu.memory_space<semaphore_mem>>
    %18 = tpu.memref_squeeze %17 : memref<1x!tpu.dma_semaphore, #tpu.memory_space<semaphore_mem>> -> memref<!tpu.dma_semaphore, #tpu.memory_space<semaphore_mem>>
    tpu.enqueue_dma source(%15 : memref<1x128xf32, #tpu.memory_space<any>>) target(%16 : memref<1x128xf32, #tpu.memory_space<vmem>>) target_semaphore(%18 : memref<!tpu.dma_semaphore, #tpu.memory_space<semaphore_mem>>)
    %c1_i32 = arith.constant 1 : i32
    %19 = arith.addi %6, %c1_i32 : i32
    %20 = arith.addi %4, %19 : i32
    %21 = arith.index_cast %arg1 : i32 to index
    %22 = arith.index_cast %20 : i32 to index
    %23 = memref.load %arg2[%21, %22] : memref<2x8xi32, #tpu.memory_space<smem>>
    %c0_i32_9 = arith.constant 0 : i32
    %24 = arith.maxsi %23, %c0_i32_9 : i32
    %c63_i32_10 = arith.constant 63 : i32
    %25 = arith.minsi %24, %c63_i32_10 : i32
    %c0_i32_11 = arith.constant 0 : i32
    %26 = arith.addi %c0_i32_11, %19 : i32
    %c0_i32_12 = arith.constant 0 : i32
    %c0_i32_13 = arith.constant 0 : i32
    %27 = tpu.memref_slice %arg6[%25, %c0_i32_13] : memref<64x128xf32, #tpu.memory_space<any>> -> memref<1x128xf32, #tpu.memory_space<any>>
    %c0_i32_14 = arith.constant 0 : i32
    %28 = tpu.memref_slice %arg8[%26, %c0_i32_14] : memref<16x128xf32, #tpu.memory_space<vmem>> -> memref<1x128xf32, #tpu.memory_space<vmem>>
    %29 = tpu.memref_slice %arg9[%c0_i32_12] : memref<2x!tpu.dma_semaphore, #tpu.memory_space<semaphore_mem>> -> memref<1x!tpu.dma_semaphore, #tpu.memory_space<semaphore_mem>>
    %30 = tpu.memref_squeeze %29 : memref<1x!tpu.dma_semaphore, #tpu.memory_space<semaphore_mem>> -> memref<!tpu.dma_semaphore, #tpu.memory_space<semaphore_mem>>
    tpu.enqueue_dma source(%27 : memref<1x128xf32, #tpu.memory_space<any>>) target(%28 : memref<1x128xf32, #tpu.memory_space<vmem>>) target_semaphore(%30 : memref<!tpu.dma_semaphore, #tpu.memory_space<semaphore_mem>>)
    %c2_i32 = arith.constant 2 : i32
    %31 = arith.addi %6, %c2_i32 : i32
    %32 = arith.addi %4, %31 : i32
    %33 = arith.index_cast %arg1 : i32 to index
    %34 = arith.index_cast %32 : i32 to index
    %35 = memref.load %arg2[%33, %34] : memref<2x8xi32, #tpu.memory_space<smem>>
    %c0_i32_15 = arith.constant 0 : i32
    %36 = arith.maxsi %35, %c0_i32_15 : i32
    %c63_i32_16 = arith.constant 63 : i32
    %37 = arith.minsi %36, %c63_i32_16 : i32
    %c0_i32_17 = arith.constant 0 : i32
    %38 = arith.addi %c0_i32_17, %31 : i32
    %c0_i32_18 = arith.constant 0 : i32
    %c0_i32_19 = arith.constant 0 : i32
    %39 = tpu.memref_slice %arg6[%37, %c0_i32_19] : memref<64x128xf32, #tpu.memory_space<any>> -> memref<1x128xf32, #tpu.memory_space<any>>
    %c0_i32_20 = arith.constant 0 : i32
    %40 = tpu.memref_slice %arg8[%38, %c0_i32_20] : memref<16x128xf32, #tpu.memory_space<vmem>> -> memref<1x128xf32, #tpu.memory_space<vmem>>
    %41 = tpu.memref_slice %arg9[%c0_i32_18] : memref<2x!tpu.dma_semaphore, #tpu.memory_space<semaphore_mem>> -> memref<1x!tpu.dma_semaphore, #tpu.memory_space<semaphore_mem>>
    %42 = tpu.memref_squeeze %41 : memref<1x!tpu.dma_semaphore, #tpu.memory_space<semaphore_mem>> -> memref<!tpu.dma_semaphore, #tpu.memory_space<semaphore_mem>>
    tpu.enqueue_dma source(%39 : memref<1x128xf32, #tpu.memory_space<any>>) target(%40 : memref<1x128xf32, #tpu.memory_space<vmem>>) target_semaphore(%42 : memref<!tpu.dma_semaphore, #tpu.memory_space<semaphore_mem>>)
    %c3_i32 = arith.constant 3 : i32
    %43 = arith.addi %6, %c3_i32 : i32
    %44 = arith.addi %4, %43 : i32
    %45 = arith.index_cast %arg1 : i32 to index
    %46 = arith.index_cast %44 : i32 to index
    %47 = memref.load %arg2[%45, %46] : memref<2x8xi32, #tpu.memory_space<smem>>
    %c0_i32_21 = arith.constant 0 : i32
    %48 = arith.maxsi %47, %c0_i32_21 : i32
    %c63_i32_22 = arith.constant 63 : i32
    %49 = arith.minsi %48, %c63_i32_22 : i32
    %c0_i32_23 = arith.constant 0 : i32
    %50 = arith.addi %c0_i32_23, %43 : i32
    %c0_i32_24 = arith.constant 0 : i32
    %c0_i32_25 = arith.constant 0 : i32
    %51 = tpu.memref_slice %arg6[%49, %c0_i32_25] : memref<64x128xf32, #tpu.memory_space<any>> -> memref<1x128xf32, #tpu.memory_space<any>>
    %c0_i32_26 = arith.constant 0 : i32
    %52 = tpu.memref_slice %arg8[%50, %c0_i32_26] : memref<16x128xf32, #tpu.memory_space<vmem>> -> memref<1x128xf32, #tpu.memory_space<vmem>>
    %53 = tpu.memref_slice %arg9[%c0_i32_24] : memref<2x!tpu.dma_semaphore, #tpu.memory_space<semaphore_mem>> -> memref<1x!tpu.dma_semaphore, #tpu.memory_space<semaphore_mem>>
    %54 = tpu.memref_squeeze %53 : memref<1x!tpu.dma_semaphore, #tpu.memory_space<semaphore_mem>> -> memref<!tpu.dma_semaphore, #tpu.memory_space<semaphore_mem>>
    tpu.enqueue_dma source(%51 : memref<1x128xf32, #tpu.memory_space<any>>) target(%52 : memref<1x128xf32, #tpu.memory_space<vmem>>) target_semaphore(%54 : memref<!tpu.dma_semaphore, #tpu.memory_space<semaphore_mem>>)
    %c4_i32 = arith.constant 4 : i32
    %55 = arith.addi %6, %c4_i32 : i32
    %56 = arith.addi %4, %55 : i32
    %57 = arith.index_cast %arg1 : i32 to index
    %58 = arith.index_cast %56 : i32 to index
    %59 = memref.load %arg2[%57, %58] : memref<2x8xi32, #tpu.memory_space<smem>>
    %c0_i32_27 = arith.constant 0 : i32
    %60 = arith.maxsi %59, %c0_i32_27 : i32
    %c63_i32_28 = arith.constant 63 : i32
    %61 = arith.minsi %60, %c63_i32_28 : i32
    %c0_i32_29 = arith.constant 0 : i32
    %62 = arith.addi %c0_i32_29, %55 : i32
    %c0_i32_30 = arith.constant 0 : i32
    %c0_i32_31 = arith.constant 0 : i32
    %63 = tpu.memref_slice %arg6[%61, %c0_i32_31] : memref<64x128xf32, #tpu.memory_space<any>> -> memref<1x128xf32, #tpu.memory_space<any>>
    %c0_i32_32 = arith.constant 0 : i32
    %64 = tpu.memref_slice %arg8[%62, %c0_i32_32] : memref<16x128xf32, #tpu.memory_space<vmem>> -> memref<1x128xf32, #tpu.memory_space<vmem>>
    %65 = tpu.memref_slice %arg9[%c0_i32_30] : memref<2x!tpu.dma_semaphore, #tpu.memory_space<semaphore_mem>> -> memref<1x!tpu.dma_semaphore, #tpu.memory_space<semaphore_mem>>
    %66 = tpu.memref_squeeze %65 : memref<1x!tpu.dma_semaphore, #tpu.memory_space<semaphore_mem>> -> memref<!tpu.dma_semaphore, #tpu.memory_space<semaphore_mem>>
    tpu.enqueue_dma source(%63 : memref<1x128xf32, #tpu.memory_space<any>>) target(%64 : memref<1x128xf32, #tpu.memory_space<vmem>>) target_semaphore(%66 : memref<!tpu.dma_semaphore, #tpu.memory_space<semaphore_mem>>)
    %c5_i32 = arith.constant 5 : i32
    %67 = arith.addi %6, %c5_i32 : i32
    %68 = arith.addi %4, %67 : i32
    %69 = arith.index_cast %arg1 : i32 to index
    %70 = arith.index_cast %68 : i32 to index
    %71 = memref.load %arg2[%69, %70] : memref<2x8xi32, #tpu.memory_space<smem>>
    %c0_i32_33 = arith.constant 0 : i32
    %72 = arith.maxsi %71, %c0_i32_33 : i32
    %c63_i32_34 = arith.constant 63 : i32
    %73 = arith.minsi %72, %c63_i32_34 : i32
    %c0_i32_35 = arith.constant 0 : i32
    %74 = arith.addi %c0_i32_35, %67 : i32
    %c0_i32_36 = arith.constant 0 : i32
    %c0_i32_37 = arith.constant 0 : i32
    %75 = tpu.memref_slice %arg6[%73, %c0_i32_37] : memref<64x128xf32, #tpu.memory_space<any>> -> memref<1x128xf32, #tpu.memory_space<any>>
    %c0_i32_38 = arith.constant 0 : i32
    %76 = tpu.memref_slice %arg8[%74, %c0_i32_38] : memref<16x128xf32, #tpu.memory_space<vmem>> -> memref<1x128xf32, #tpu.memory_space<vmem>>
    %77 = tpu.memref_slice %arg9[%c0_i32_36] : memref<2x!tpu.dma_semaphore, #tpu.memory_space<semaphore_mem>> -> memref<1x!tpu.dma_semaphore, #tpu.memory_space<semaphore_mem>>
    %78 = tpu.memref_squeeze %77 : memref<1x!tpu.dma_semaphore, #tpu.memory_space<semaphore_mem>> -> memref<!tpu.dma_semaphore, #tpu.memory_space<semaphore_mem>>
    tpu.enqueue_dma source(%75 : memref<1x128xf32, #tpu.memory_space<any>>) target(%76 : memref<1x128xf32, #tpu.memory_space<vmem>>) target_semaphore(%78 : memref<!tpu.dma_semaphore, #tpu.memory_space<semaphore_mem>>)
    %c6_i32 = arith.constant 6 : i32
    %79 = arith.addi %6, %c6_i32 : i32
    %80 = arith.addi %4, %79 : i32
    %81 = arith.index_cast %arg1 : i32 to index
    %82 = arith.index_cast %80 : i32 to index
    %83 = memref.load %arg2[%81, %82] : memref<2x8xi32, #tpu.memory_space<smem>>
    %c0_i32_39 = arith.constant 0 : i32
    %84 = arith.maxsi %83, %c0_i32_39 : i32
    %c63_i32_40 = arith.constant 63 : i32
    %85 = arith.minsi %84, %c63_i32_40 : i32
    %c0_i32_41 = arith.constant 0 : i32
    %86 = arith.addi %c0_i32_41, %79 : i32
    %c0_i32_42 = arith.constant 0 : i32
    %c0_i32_43 = arith.constant 0 : i32
    %87 = tpu.memref_slice %arg6[%85, %c0_i32_43] : memref<64x128xf32, #tpu.memory_space<any>> -> memref<1x128xf32, #tpu.memory_space<any>>
    %c0_i32_44 = arith.constant 0 : i32
    %88 = tpu.memref_slice %arg8[%86, %c0_i32_44] : memref<16x128xf32, #tpu.memory_space<vmem>> -> memref<1x128xf32, #tpu.memory_space<vmem>>
    %89 = tpu.memref_slice %arg9[%c0_i32_42] : memref<2x!tpu.dma_semaphore, #tpu.memory_space<semaphore_mem>> -> memref<1x!tpu.dma_semaphore, #tpu.memory_space<semaphore_mem>>
    %90 = tpu.memref_squeeze %89 : memref<1x!tpu.dma_semaphore, #tpu.memory_space<semaphore_mem>> -> memref<!tpu.dma_semaphore, #tpu.memory_space<semaphore_mem>>
    tpu.enqueue_dma source(%87 : memref<1x128xf32, #tpu.memory_space<any>>) target(%88 : memref<1x128xf32, #tpu.memory_space<vmem>>) target_semaphore(%90 : memref<!tpu.dma_semaphore, #tpu.memory_space<semaphore_mem>>)
    %c7_i32 = arith.constant 7 : i32
    %91 = arith.addi %6, %c7_i32 : i32
    %92 = arith.addi %4, %91 : i32
    %93 = arith.index_cast %arg1 : i32 to index
    %94 = arith.index_cast %92 : i32 to index
    %95 = memref.load %arg2[%93, %94] : memref<2x8xi32, #tpu.memory_space<smem>>
    %c0_i32_45 = arith.constant 0 : i32
    %96 = arith.maxsi %95, %c0_i32_45 : i32
    %c63_i32_46 = arith.constant 63 : i32
    %97 = arith.minsi %96, %c63_i32_46 : i32
    %c0_i32_47 = arith.constant 0 : i32
    %98 = arith.addi %c0_i32_47, %91 : i32
    %c0_i32_48 = arith.constant 0 : i32
    %c0_i32_49 = arith.constant 0 : i32
    %99 = tpu.memref_slice %arg6[%97, %c0_i32_49] : memref<64x128xf32, #tpu.memory_space<any>> -> memref<1x128xf32, #tpu.memory_space<any>>
    %c0_i32_50 = arith.constant 0 : i32
    %100 = tpu.memref_slice %arg8[%98, %c0_i32_50] : memref<16x128xf32, #tpu.memory_space<vmem>> -> memref<1x128xf32, #tpu.memory_space<vmem>>
    %101 = tpu.memref_slice %arg9[%c0_i32_48] : memref<2x!tpu.dma_semaphore, #tpu.memory_space<semaphore_mem>> -> memref<1x!tpu.dma_semaphore, #tpu.memory_space<semaphore_mem>>
    %102 = tpu.memref_squeeze %101 : memref<1x!tpu.dma_semaphore, #tpu.memory_space<semaphore_mem>> -> memref<!tpu.dma_semaphore, #tpu.memory_space<semaphore_mem>>
    tpu.enqueue_dma source(%99 : memref<1x128xf32, #tpu.memory_space<any>>) target(%100 : memref<1x128xf32, #tpu.memory_space<vmem>>) target_semaphore(%102 : memref<!tpu.dma_semaphore, #tpu.memory_space<semaphore_mem>>)
    %c1_i32_51 = arith.constant 1 : i32
    %c0_i32_52 = arith.constant 0 : i32
    %c1_i32_53 = arith.constant 1 : i32
    %103 = arith.muli %c0_i32_52, %c1_i32_53 : i32
    %c0_i32_54 = arith.constant 0 : i32
    %104 = arith.addi %c0_i32_54, %103 : i32
    %c1_i32_55 = arith.constant 1 : i32
    %105 = arith.andi %104, %c1_i32_55 : i32
    %c1_i32_56 = arith.constant 1 : i32
    %106 = arith.addi %104, %c1_i32_56 : i32
    %c1_i32_57 = arith.constant 1 : i32
    %107 = arith.cmpi slt, %106, %c1_i32_57 : i32
    %108 = arith.extui %107 : i1 to i32
    %c0_i32_58 = arith.constant 0 : i32
    %109 = arith.cmpi ne, %108, %c0_i32_58 : i32
    scf.if %109 {
      %c1_i32_73 = arith.constant 1 : i32
      %141 = arith.addi %104, %c1_i32_73 : i32
      %c1_i32_74 = arith.constant 1 : i32
      %142 = arith.subi %c1_i32_74, %105 : i32
      %c8_i32_75 = arith.constant 8 : i32
      %143 = arith.muli %142, %c8_i32_75 : i32
      %c8_i32_76 = arith.constant 8 : i32
      %144 = arith.muli %141, %c8_i32_76 : i32
      %145 = arith.addi %0, %144 : i32
      %c0_i32_77 = arith.constant 0 : i32
      %c8_i32_78 = arith.constant 8 : i32
      %146 = arith.muli %c0_i32_77, %c8_i32_78 : i32
      %147 = tpu.assume_multiple %146, 8 : i32
      %c0_i32_79 = arith.constant 0 : i32
      %148 = arith.addi %147, %c0_i32_79 : i32
      %149 = arith.addi %145, %148 : i32
      %150 = arith.index_cast %arg1 : i32 to index
      %151 = arith.index_cast %149 : i32 to index
      %152 = memref.load %arg2[%150, %151] : memref<2x8xi32, #tpu.memory_space<smem>>
      %c0_i32_80 = arith.constant 0 : i32
      %153 = arith.maxsi %152, %c0_i32_80 : i32
      %c63_i32_81 = arith.constant 63 : i32
      %154 = arith.minsi %153, %c63_i32_81 : i32
      %155 = arith.addi %143, %148 : i32
      %c0_i32_82 = arith.constant 0 : i32
      %156 = tpu.memref_slice %arg6[%154, %c0_i32_82] : memref<64x128xf32, #tpu.memory_space<any>> -> memref<1x128xf32, #tpu.memory_space<any>>
      %c0_i32_83 = arith.constant 0 : i32
      %157 = tpu.memref_slice %arg8[%155, %c0_i32_83] : memref<16x128xf32, #tpu.memory_space<vmem>> -> memref<1x128xf32, #tpu.memory_space<vmem>>
      %158 = tpu.memref_slice %arg9[%142] : memref<2x!tpu.dma_semaphore, #tpu.memory_space<semaphore_mem>> -> memref<1x!tpu.dma_semaphore, #tpu.memory_space<semaphore_mem>>
      %159 = tpu.memref_squeeze %158 : memref<1x!tpu.dma_semaphore, #tpu.memory_space<semaphore_mem>> -> memref<!tpu.dma_semaphore, #tpu.memory_space<semaphore_mem>>
      tpu.enqueue_dma source(%156 : memref<1x128xf32, #tpu.memory_space<any>>) target(%157 : memref<1x128xf32, #tpu.memory_space<vmem>>) target_semaphore(%159 : memref<!tpu.dma_semaphore, #tpu.memory_space<semaphore_mem>>)
      %c1_i32_84 = arith.constant 1 : i32
      %160 = arith.addi %147, %c1_i32_84 : i32
      %161 = arith.addi %145, %160 : i32
      %162 = arith.index_cast %arg1 : i32 to index
      %163 = arith.index_cast %161 : i32 to index
      %164 = memref.load %arg2[%162, %163] : memref<2x8xi32, #tpu.memory_space<smem>>
      %c0_i32_85 = arith.constant 0 : i32
      %165 = arith.maxsi %164, %c0_i32_85 : i32
      %c63_i32_86 = arith.constant 63 : i32
      %166 = arith.minsi %165, %c63_i32_86 : i32
      %167 = arith.addi %143, %160 : i32
      %c0_i32_87 = arith.constant 0 : i32
      %168 = tpu.memref_slice %arg6[%166, %c0_i32_87] : memref<64x128xf32, #tpu.memory_space<any>> -> memref<1x128xf32, #tpu.memory_space<any>>
      %c0_i32_88 = arith.constant 0 : i32
      %169 = tpu.memref_slice %arg8[%167, %c0_i32_88] : memref<16x128xf32, #tpu.memory_space<vmem>> -> memref<1x128xf32, #tpu.memory_space<vmem>>
      %170 = tpu.memref_slice %arg9[%142] : memref<2x!tpu.dma_semaphore, #tpu.memory_space<semaphore_mem>> -> memref<1x!tpu.dma_semaphore, #tpu.memory_space<semaphore_mem>>
      %171 = tpu.memref_squeeze %170 : memref<1x!tpu.dma_semaphore, #tpu.memory_space<semaphore_mem>> -> memref<!tpu.dma_semaphore, #tpu.memory_space<semaphore_mem>>
      tpu.enqueue_dma source(%168 : memref<1x128xf32, #tpu.memory_space<any>>) target(%169 : memref<1x128xf32, #tpu.memory_space<vmem>>) target_semaphore(%171 : memref<!tpu.dma_semaphore, #tpu.memory_space<semaphore_mem>>)
      %c2_i32_89 = arith.constant 2 : i32
      %172 = arith.addi %147, %c2_i32_89 : i32
      %173 = arith.addi %145, %172 : i32
      %174 = arith.index_cast %arg1 : i32 to index
      %175 = arith.index_cast %173 : i32 to index
      %176 = memref.load %arg2[%174, %175] : memref<2x8xi32, #tpu.memory_space<smem>>
      %c0_i32_90 = arith.constant 0 : i32
      %177 = arith.maxsi %176, %c0_i32_90 : i32
      %c63_i32_91 = arith.constant 63 : i32
      %178 = arith.minsi %177, %c63_i32_91 : i32
      %179 = arith.addi %143, %172 : i32
      %c0_i32_92 = arith.constant 0 : i32
      %180 = tpu.memref_slice %arg6[%178, %c0_i32_92] : memref<64x128xf32, #tpu.memory_space<any>> -> memref<1x128xf32, #tpu.memory_space<any>>
      %c0_i32_93 = arith.constant 0 : i32
      %181 = tpu.memref_slice %arg8[%179, %c0_i32_93] : memref<16x128xf32, #tpu.memory_space<vmem>> -> memref<1x128xf32, #tpu.memory_space<vmem>>
      %182 = tpu.memref_slice %arg9[%142] : memref<2x!tpu.dma_semaphore, #tpu.memory_space<semaphore_mem>> -> memref<1x!tpu.dma_semaphore, #tpu.memory_space<semaphore_mem>>
      %183 = tpu.memref_squeeze %182 : memref<1x!tpu.dma_semaphore, #tpu.memory_space<semaphore_mem>> -> memref<!tpu.dma_semaphore, #tpu.memory_space<semaphore_mem>>
      tpu.enqueue_dma source(%180 : memref<1x128xf32, #tpu.memory_space<any>>) target(%181 : memref<1x128xf32, #tpu.memory_space<vmem>>) target_semaphore(%183 : memref<!tpu.dma_semaphore, #tpu.memory_space<semaphore_mem>>)
      %c3_i32_94 = arith.constant 3 : i32
      %184 = arith.addi %147, %c3_i32_94 : i32
      %185 = arith.addi %145, %184 : i32
      %186 = arith.index_cast %arg1 : i32 to index
      %187 = arith.index_cast %185 : i32 to index
      %188 = memref.load %arg2[%186, %187] : memref<2x8xi32, #tpu.memory_space<smem>>
      %c0_i32_95 = arith.constant 0 : i32
      %189 = arith.maxsi %188, %c0_i32_95 : i32
      %c63_i32_96 = arith.constant 63 : i32
      %190 = arith.minsi %189, %c63_i32_96 : i32
      %191 = arith.addi %143, %184 : i32
      %c0_i32_97 = arith.constant 0 : i32
      %192 = tpu.memref_slice %arg6[%190, %c0_i32_97] : memref<64x128xf32, #tpu.memory_space<any>> -> memref<1x128xf32, #tpu.memory_space<any>>
      %c0_i32_98 = arith.constant 0 : i32
      %193 = tpu.memref_slice %arg8[%191, %c0_i32_98] : memref<16x128xf32, #tpu.memory_space<vmem>> -> memref<1x128xf32, #tpu.memory_space<vmem>>
      %194 = tpu.memref_slice %arg9[%142] : memref<2x!tpu.dma_semaphore, #tpu.memory_space<semaphore_mem>> -> memref<1x!tpu.dma_semaphore, #tpu.memory_space<semaphore_mem>>
      %195 = tpu.memref_squeeze %194 : memref<1x!tpu.dma_semaphore, #tpu.memory_space<semaphore_mem>> -> memref<!tpu.dma_semaphore, #tpu.memory_space<semaphore_mem>>
      tpu.enqueue_dma source(%192 : memref<1x128xf32, #tpu.memory_space<any>>) target(%193 : memref<1x128xf32, #tpu.memory_space<vmem>>) target_semaphore(%195 : memref<!tpu.dma_semaphore, #tpu.memory_space<semaphore_mem>>)
      %c4_i32_99 = arith.constant 4 : i32
      %196 = arith.addi %147, %c4_i32_99 : i32
      %197 = arith.addi %145, %196 : i32
      %198 = arith.index_cast %arg1 : i32 to index
      %199 = arith.index_cast %197 : i32 to index
      %200 = memref.load %arg2[%198, %199] : memref<2x8xi32, #tpu.memory_space<smem>>
      %c0_i32_100 = arith.constant 0 : i32
      %201 = arith.maxsi %200, %c0_i32_100 : i32
      %c63_i32_101 = arith.constant 63 : i32
      %202 = arith.minsi %201, %c63_i32_101 : i32
      %203 = arith.addi %143, %196 : i32
      %c0_i32_102 = arith.constant 0 : i32
      %204 = tpu.memref_slice %arg6[%202, %c0_i32_102] : memref<64x128xf32, #tpu.memory_space<any>> -> memref<1x128xf32, #tpu.memory_space<any>>
      %c0_i32_103 = arith.constant 0 : i32
      %205 = tpu.memref_slice %arg8[%203, %c0_i32_103] : memref<16x128xf32, #tpu.memory_space<vmem>> -> memref<1x128xf32, #tpu.memory_space<vmem>>
      %206 = tpu.memref_slice %arg9[%142] : memref<2x!tpu.dma_semaphore, #tpu.memory_space<semaphore_mem>> -> memref<1x!tpu.dma_semaphore, #tpu.memory_space<semaphore_mem>>
      %207 = tpu.memref_squeeze %206 : memref<1x!tpu.dma_semaphore, #tpu.memory_space<semaphore_mem>> -> memref<!tpu.dma_semaphore, #tpu.memory_space<semaphore_mem>>
      tpu.enqueue_dma source(%204 : memref<1x128xf32, #tpu.memory_space<any>>) target(%205 : memref<1x128xf32, #tpu.memory_space<vmem>>) target_semaphore(%207 : memref<!tpu.dma_semaphore, #tpu.memory_space<semaphore_mem>>)
      %c5_i32_104 = arith.constant 5 : i32
      %208 = arith.addi %147, %c5_i32_104 : i32
      %209 = arith.addi %145, %208 : i32
      %210 = arith.index_cast %arg1 : i32 to index
      %211 = arith.index_cast %209 : i32 to index
      %212 = memref.load %arg2[%210, %211] : memref<2x8xi32, #tpu.memory_space<smem>>
      %c0_i32_105 = arith.constant 0 : i32
      %213 = arith.maxsi %212, %c0_i32_105 : i32
      %c63_i32_106 = arith.constant 63 : i32
      %214 = arith.minsi %213, %c63_i32_106 : i32
      %215 = arith.addi %143, %208 : i32
      %c0_i32_107 = arith.constant 0 : i32
      %216 = tpu.memref_slice %arg6[%214, %c0_i32_107] : memref<64x128xf32, #tpu.memory_space<any>> -> memref<1x128xf32, #tpu.memory_space<any>>
      %c0_i32_108 = arith.constant 0 : i32
      %217 = tpu.memref_slice %arg8[%215, %c0_i32_108] : memref<16x128xf32, #tpu.memory_space<vmem>> -> memref<1x128xf32, #tpu.memory_space<vmem>>
      %218 = tpu.memref_slice %arg9[%142] : memref<2x!tpu.dma_semaphore, #tpu.memory_space<semaphore_mem>> -> memref<1x!tpu.dma_semaphore, #tpu.memory_space<semaphore_mem>>
      %219 = tpu.memref_squeeze %218 : memref<1x!tpu.dma_semaphore, #tpu.memory_space<semaphore_mem>> -> memref<!tpu.dma_semaphore, #tpu.memory_space<semaphore_mem>>
      tpu.enqueue_dma source(%216 : memref<1x128xf32, #tpu.memory_space<any>>) target(%217 : memref<1x128xf32, #tpu.memory_space<vmem>>) target_semaphore(%219 : memref<!tpu.dma_semaphore, #tpu.memory_space<semaphore_mem>>)
      %c6_i32_109 = arith.constant 6 : i32
      %220 = arith.addi %147, %c6_i32_109 : i32
      %221 = arith.addi %145, %220 : i32
      %222 = arith.index_cast %arg1 : i32 to index
      %223 = arith.index_cast %221 : i32 to index
      %224 = memref.load %arg2[%222, %223] : memref<2x8xi32, #tpu.memory_space<smem>>
      %c0_i32_110 = arith.constant 0 : i32
      %225 = arith.maxsi %224, %c0_i32_110 : i32
      %c63_i32_111 = arith.constant 63 : i32
      %226 = arith.minsi %225, %c63_i32_111 : i32
      %227 = arith.addi %143, %220 : i32
      %c0_i32_112 = arith.constant 0 : i32
      %228 = tpu.memref_slice %arg6[%226, %c0_i32_112] : memref<64x128xf32, #tpu.memory_space<any>> -> memref<1x128xf32, #tpu.memory_space<any>>
      %c0_i32_113 = arith.constant 0 : i32
      %229 = tpu.memref_slice %arg8[%227, %c0_i32_113] : memref<16x128xf32, #tpu.memory_space<vmem>> -> memref<1x128xf32, #tpu.memory_space<vmem>>
      %230 = tpu.memref_slice %arg9[%142] : memref<2x!tpu.dma_semaphore, #tpu.memory_space<semaphore_mem>> -> memref<1x!tpu.dma_semaphore, #tpu.memory_space<semaphore_mem>>
      %231 = tpu.memref_squeeze %230 : memref<1x!tpu.dma_semaphore, #tpu.memory_space<semaphore_mem>> -> memref<!tpu.dma_semaphore, #tpu.memory_space<semaphore_mem>>
      tpu.enqueue_dma source(%228 : memref<1x128xf32, #tpu.memory_space<any>>) target(%229 : memref<1x128xf32, #tpu.memory_space<vmem>>) target_semaphore(%231 : memref<!tpu.dma_semaphore, #tpu.memory_space<semaphore_mem>>)
      %c7_i32_114 = arith.constant 7 : i32
      %232 = arith.addi %147, %c7_i32_114 : i32
      %233 = arith.addi %145, %232 : i32
      %234 = arith.index_cast %arg1 : i32 to index
      %235 = arith.index_cast %233 : i32 to index
      %236 = memref.load %arg2[%234, %235] : memref<2x8xi32, #tpu.memory_space<smem>>
      %c0_i32_115 = arith.constant 0 : i32
      %237 = arith.maxsi %236, %c0_i32_115 : i32
      %c63_i32_116 = arith.constant 63 : i32
      %238 = arith.minsi %237, %c63_i32_116 : i32
      %239 = arith.addi %143, %232 : i32
      %c0_i32_117 = arith.constant 0 : i32
      %240 = tpu.memref_slice %arg6[%238, %c0_i32_117] : memref<64x128xf32, #tpu.memory_space<any>> -> memref<1x128xf32, #tpu.memory_space<any>>
      %c0_i32_118 = arith.constant 0 : i32
      %241 = tpu.memref_slice %arg8[%239, %c0_i32_118] : memref<16x128xf32, #tpu.memory_space<vmem>> -> memref<1x128xf32, #tpu.memory_space<vmem>>
      %242 = tpu.memref_slice %arg9[%142] : memref<2x!tpu.dma_semaphore, #tpu.memory_space<semaphore_mem>> -> memref<1x!tpu.dma_semaphore, #tpu.memory_space<semaphore_mem>>
      %243 = tpu.memref_squeeze %242 : memref<1x!tpu.dma_semaphore, #tpu.memory_space<semaphore_mem>> -> memref<!tpu.dma_semaphore, #tpu.memory_space<semaphore_mem>>
      tpu.enqueue_dma source(%240 : memref<1x128xf32, #tpu.memory_space<any>>) target(%241 : memref<1x128xf32, #tpu.memory_space<vmem>>) target_semaphore(%243 : memref<!tpu.dma_semaphore, #tpu.memory_space<semaphore_mem>>)
      %c1_i32_119 = arith.constant 1 : i32
    } else {
    }
    %c8_i32_59 = arith.constant 8 : i32
    %110 = arith.muli %105, %c8_i32_59 : i32
    %c0_i32_60 = arith.constant 0 : i32
    %c0_i32_61 = arith.constant 0 : i32
    %111 = tpu.memref_slice %arg6[%c0_i32_60, %c0_i32_61] : memref<64x128xf32, #tpu.memory_space<any>> -> memref<8x128xf32, #tpu.memory_space<any>>
    %c0_i32_62 = arith.constant 0 : i32
    %112 = tpu.memref_slice %arg8[%110, %c0_i32_62] : memref<16x128xf32, #tpu.memory_space<vmem>> -> memref<8x128xf32, #tpu.memory_space<vmem>>
    %113 = tpu.memref_slice %arg9[%105] : memref<2x!tpu.dma_semaphore, #tpu.memory_space<semaphore_mem>> -> memref<1x!tpu.dma_semaphore, #tpu.memory_space<semaphore_mem>>
    %114 = tpu.memref_squeeze %113 : memref<1x!tpu.dma_semaphore, #tpu.memory_space<semaphore_mem>> -> memref<!tpu.dma_semaphore, #tpu.memory_space<semaphore_mem>>
    tpu.wait_dma2 semaphore(%114 : memref<!tpu.dma_semaphore, #tpu.memory_space<semaphore_mem>>) src(%111 : memref<8x128xf32, #tpu.memory_space<any>>) dst(%112 : memref<8x128xf32, #tpu.memory_space<vmem>>)
    %c8_i32_63 = arith.constant 8 : i32
    %115 = arith.muli %104, %c8_i32_63 : i32
    %116 = tpu.assume_multiple %115, 8 : i32
    %c8_i32_64 = arith.constant 8 : i32
    %117 = arith.muli %105, %c8_i32_64 : i32
    %118 = tpu.assume_multiple %117, 8 : i32
    %119 = arith.index_cast %118 : i32 to index
    %c0_65 = arith.constant 0 : index
    %120 = vector.load %arg8[%119, %c0_65] : memref<16x128xf32, #tpu.memory_space<vmem>>, vector<8x128xf32>
    %121 = arith.index_cast %116 : i32 to index
    %c0_66 = arith.constant 0 : index
    %122 = vector.load %arg4[%121, %c0_66] : memref<8x128xf32, #tpu.memory_space<vmem>>, vector<8x128xf32>
    %123 = arith.addf %120, %122 : vector<8x128xf32>
    %c0_67 = arith.constant 0 : index
    %124 = arith.index_cast %116 : i32 to index
    %c0_68 = arith.constant 0 : index
    %125 = vector.load %arg3[%c0_67, %124, %c0_68] : memref<1x8x1xi32, #tpu.memory_space<vmem>>, vector<1x8x1xi32>
    %126 = vector.shape_cast %125 : vector<1x8x1xi32> to vector<8x1xi32>
    %c0_i32_69 = arith.constant 0 : i32
    %127 = vector.broadcast %c0_i32_69 : i32 to vector<8x1xi32>
    %128 = arith.cmpi sgt, %126, %127 : vector<8x1xi32>
    %129 = vector.shape_cast %128 : vector<8x1xi1> to vector<8x1xi1>
    %130 = vector.broadcast %129 : vector<8x1xi1> to vector<8x128xi1>
    %131 = vector.shape_cast %3 : vector<1x128xf32> to vector<1x128xf32>
    %132 = vector.broadcast %131 : vector<1x128xf32> to vector<8x128xf32>
    %133 = vector.shape_cast %2 : vector<1x128xf32> to vector<1x128xf32>
    %134 = vector.broadcast %133 : vector<1x128xf32> to vector<8x128xf32>
    %135 = arith.select %130, %132, %134 : vector<8x128xi1>, vector<8x128xf32>
    %136 = arith.addf %123, %135 : vector<8x128xf32>
    %c0_70 = arith.constant 0 : index
    %137 = arith.index_cast %116 : i32 to index
    %c0_71 = arith.constant 0 : index
    %138 = vector.load %arg7[%c0_70, %137, %c0_71] : memref<1x8x128xf32, #tpu.memory_space<vmem>>, vector<1x8x128xf32>
    %139 = vector.shape_cast %138 : vector<1x8x128xf32> to vector<8x128xf32>
    %140 = vector.shape_cast %136 : vector<8x128xf32> to vector<1x8x128xf32>
    tpu.vector_store %arg7[%c0_70, %137, %c0_71], %140 {strides = array<i32>} : memref<1x8x128xf32, #tpu.memory_space<vmem>>, vector<1x8x128xf32>,
    %c1_i32_72 = arith.constant 1 : i32
    return
  }
  func.func @transform_0(%arg0: i32, %arg1: i32, %arg2: memref<2x8xi32, #tpu.memory_space<smem>>) -> (i32, i32, i32) {
    %c0_i32 = arith.constant 0 : i32
    %c0_i32_0 = arith.constant 0 : i32
    return %arg1, %arg0, %c0_i32 : i32, i32, i32
  }
  func.func @transform_1(%arg0: i32, %arg1: i32, %arg2: memref<2x8xi32, #tpu.memory_space<smem>>) -> (i32, i32) {
    %c0_i32 = arith.constant 0 : i32
    %c0_i32_0 = arith.constant 0 : i32
    return %arg0, %c0_i32 : i32, i32
  }
  func.func @transform_2(%arg0: i32, %arg1: i32, %arg2: memref<2x8xi32, #tpu.memory_space<smem>>) -> (i32, i32) {
    %c0_i32 = arith.constant 0 : i32
    %c0_i32_0 = arith.constant 0 : i32
    %c0_i32_1 = arith.constant 0 : i32
    return %c0_i32, %c0_i32_0 : i32, i32
  }
  func.func @transform_4(%arg0: i32, %arg1: i32, %arg2: memref<2x8xi32, #tpu.memory_space<smem>>) -> (i32, i32, i32) {
    %c0_i32 = arith.constant 0 : i32
    %c0_i32_0 = arith.constant 0 : i32
    return %arg1, %arg0, %c0_i32 : i32, i32, i32
  }
}

</mosaic_0001>

<bundles_post_ra>
// kernel: tpu_custom_call.1
= control target key start
LH: loop header
LB: loop body
LE: loop exit
PB: predicated region body
PF: predicated region fallthrough
CT: control target
= control target key end

     0   :  { %s1348_s0 = inlined_call_operand.vmem [shape: s32[2,8], index: 0, kind: input, shape index: {}]   ;;  %s1349_s1 = inlined_call_operand.vmem [shape: s32[2,8,1], index: 1, kind: input, shape index: {}]   ;;  %s1350_s2 = inlined_call_operand.vmem [shape: f32[16,128], index: 2, kind: input, shape index: {}]   ;;  %s1351_s3 = inlined_call_operand.vmem [shape: f32[2,128], index: 3, kind: input, shape index: {}]   ;;  %s1352_s4 = inlined_call_operand.hbm [shape: f32[64,128], index: 4, kind: input, shape index: {}]   ;;  %s1353_s5 = inlined_call_operand.hbm [shape: f32[2,8,128], index: 5, kind: output, shape index: {}]  }
   0x1   :  { %1358 = sst [smem:[#allocation33_spill]] %s1349_s1  ;;  %s10_s20 = sshll.u32 %s1348_s0, 4  ;;  %s11_s20 = int_to_ptr.vmem [resolvable:$true] %s10_s20 }
   0x2   :  { %1359 = sst [smem:[#allocation34_spill]] %s1351_s3  ;;  %s753_s21 = scalar_lea.vmem %s11_s20, 32 }
   0x3   :  { %p754_p0 = scmp.ne.s32.totalorder %s11_s20, %s753_s21  ;;  %p758_p1 = scmp.lt.s32.totalorder %s11_s20, %s11_s20 }
   0x4   :  { %p759_p2 = scmp.lt.s32.totalorder %s753_s21, %s753_s21 }
   0x6   :  { %p760_p3 = por %p759_p2, %p758_p1 }
   0x8   :  { %p761_p4 = pnand %p760_p3, %p754_p0 }
   0xa   :  { %764 = shalt.err (!%p761_p4)  }
   0xb   :  { %s1023_s22 = smov [#allocation5]  }
   0xc   :  { %13 = dma.vmem_to_smem %s11_s20, 32, %s1023_s22, [#allocation4] }
   0xd   :  { %991 = dma.done.wait [#allocation4], 32 }
   0xe   :  { %992 = vsyncadd [#allocation4], 4294967264 }
   0xf   :  { %15 = sfence }
  0x10   :  { %16 = vsyncpa [#allocation7], 0 }
  0x11   :  { %18 = vsyncpa [#allocation7 + $0x1], 0  ;;  %s1067_s23 = smov 0   ;;  %s1069_s24 = smov 0  }
  0x12   :  { %s1071_s0 = smov 0   ;;  %s1073_s25 = smov 0  }
  0x13   :  { %s1075_s26 = smov 0   ;;  %s1077_s27 = smov 0  }
  0x14 LB: > { %1360 = sst [smem:[#allocation29_spill]] %s1009_s0  ;;  %s601_s28 = sadd.s32 4294967295, %s1021_s27   ;;  %s1021_s27 = sphi %s1077_s27, %s24_s27   ;;  %s1017_s26 = sphi %s1075_s26, %s1372_s26   ;;  %s1013_s25 = sphi %s1073_s25, %s1371_s25   ;;  %s1009_s0 = sphi %s1071_s0, %s1370_s0   ;;  %s1005_s24 = sphi %s1069_s24, %s1374_s24   ;;  %s1001_s23 = sphi %s1067_s23, %s1373_s23  }
  0x15   : > { %1361 = sst [smem:[#allocation30_spill]] %s1017_s26  ;;  %s602_s29 = sadd.s32 4294967294, %s1021_s27  }
  0x16   : > { %s33_s30 = sadd.s32 1, %s1017_s26  ;;  %s120_s6 = sadd.s32 1, %s1009_s0 }
  0x17   : > { %p34_p5 = scmp.ge.s32.totalorder %s33_s30, 2  ;;  %p130_p6 = scmp.ne.s32.totalorder %s1009_s0, %s1005_s24 }
  0x18   : > { %p131_p7 = scmp.eq.s32.totalorder %s601_s28, 1  ;;  %p136_p8 = scmp.ne.s32.totalorder %s1005_s24, %s1001_s23 }
  0x19   : > { %s1376_s30 = smov (%p34_p5, %s33_s30), 0  ;;  %p137_p10 = scmp.eq.s32.totalorder %s602_s29, 1 }
  0x1a   : > { %1362 = sst [smem:[#allocation31_spill]] %s1376_s30  ;;  %p1105_p9 = por %p131_p7, %p130_p6 }
  0x1b   : > { %s115_s8 = ssub.s32 %s1017_s26, %s1376_s30  ;;  %p606_p11 = scmp.ge.s32.totalorder %s1021_s27, 1 }
  0x1c   : > { %p118_p12 = scmp.eq.s32.totalorder %s115_s8, 0  ;;  %p1112_p13 = por %p137_p10, %p136_p8 }
  0x1d   : > { %p175_p0 = scmp.lt.s32.totalorder %s1021_s27, 3 }
  0x1e   : > { %s1118_s10 = scalar_select %p118_p12, %s1009_s0, %s120_s6  }
  0x1f   : > { %p176_p1 = pnand %p606_p11, %p175_p0 }
  0x20   : > { %1365 = sst [smem:[#allocation32_spill]] %s1118_s10  ;;  %s1354_s11 = sand.u32 (!%p176_p1), 1, %s1005_s24  }
  0x21   : > { %179 = sbr.rel (%p176_p1) target bundleno = 370 (0x172), region = 32  ;;  %p205_p2 = scmp.lt.s32.totalorder (!%p176_p1), %s1013_s25, 1 }
  0x22   : > { %s1366_s3 = sld [smem:[#allocation34_spill]] (!%p176_p1)  ;;  %s1128_s14 = sshll.u32 (!%p176_p1), %s1354_s11, 3 }
  0x23   : > { %s1130_s15 = sshll.u32 (!%p176_p1), %s1013_s25, 7  ;;  %s1024_s19 = smov (!%p176_p1), [#allocation2]  }
  0x24   : > { %s226_s16 = sld [smem:[#allocation5 + %s1130_s15]] (!%p176_p1)  ;;  %s252_s17 = sadd.s32 (!%p176_p1), 1, %s1130_s15 }
  0x25   : > { %s240_s20 = sshll.u32 (!%p176_p1), %s1024_s19, 4  ;;  %s1367_s1 = sld [smem:[#allocation33_spill]] (!%p176_p1)  ;;  %s1139_s20 = int_to_ptr.vmem [resolvable:$true] %s240_s20 }
  0x26   : > { %s1378_s25 = smov (!%p205_p2, %s1013_s25), 1  ;;  %s1141_s29 = sld [smem:[#allocation5 + %s252_s17]] }
  0x27   : > { %s608_s18 = sshll.u32 %s1378_s25, 3  ;;  %s1025_s6 = smov [#allocation2 + $0x1]  }
  0x28   : > { %v1124_v0 = vld [vmem:[%s1366_s3] sm:$0x3]  ;;  %s268_s8 = sshll.u32 %s1025_s6, 4  ;;  %s280_s12 = sadd.s32 2, %s1130_s15  ;;  %s1144_s8 = int_to_ptr.vmem [resolvable:$true] %s268_s8 }
  0x29   : > { %s1146_s25 = sld [smem:[#allocation5 + %s280_s12]]  ;;  %s1026_s21 = smov [#allocation2 + $0x2]  }
  0x2a   : > { %p227_p3 = scmp.gt.s32.totalorder %s226_s16, 0  ;;  %p610_p4 = scmp.lt.s32.totalorder %s226_s16, 63 }
  0x2b   : > { %s1137_s28 = scalar_lea.vmem %s1367_s1, %s608_s18  ;;  %s296_s22 = sshll.u32 %s1026_s21, 4  ;;  %s1179_s22 = int_to_ptr.vmem [resolvable:$true] %s296_s22 }
  0x2c   : > { %s1380_s16 = smov (!%p227_p3, %s226_s16), 0  ;;  %p254_p5 = scmp.gt.s32.totalorder %s1141_s29, 0 }
  0x2d   : > { %s1382_s16 = smov (!%p610_p4, %s1380_s16), 63  ;;  %p617_p6 = scmp.lt.s32.totalorder %s1141_s29, 63 }
  0x2e   : > { %s615_s13 = sshll.u32 %s1382_s16, 4  ;;  %s1156_s3 = scalar_lea.hbm %s1352_s4, 1024 }
  0x2f   : > { %s232_s17 = scalar_lea.hbm %s1352_s4, %s615_s13 }
  0x30   : > { %s765_s11 = scalar_lea.hbm %s232_s17, 16  ;;  %p768_p8 = scmp.lt.s32.totalorder %s232_s17, %s1352_s4 }
  0x31   : > { %p766_p7 = scmp.ne.s32.totalorder %s232_s17, %s765_s11  ;;  %p769_p10 = scmp.lt.s32.totalorder %s1156_s3, %s765_s11 }
  0x33   : > { %p770_p11 = por %p769_p10, %p768_p8 }
  0x35   : > { %p771_p12 = pnand %p770_p11, %p766_p7 }
  0x37   : > { %774 = shalt.err (!%p771_p12)  }
  0x38   : > { %s775_s16 = scalar_lea.vmem %s1139_s20, 16  ;;  %s1165_s13 = scalar_lea.vmem %s1139_s20, 256 }
  0x39   : > { %p776_p0 = scmp.ne.s32.totalorder %s1139_s20, %s775_s16  ;;  %p780_p1 = scmp.lt.s32.totalorder %s1139_s20, %s1139_s20 }
  0x3a   : > { %p781_p2 = scmp.lt.s32.totalorder %s1165_s13, %s775_s16 }
  0x3c   : > { %p782_p3 = por %p781_p2, %p780_p1 }
  0x3e   : > { %p783_p4 = pnand %p782_p3, %p776_p0 }
  0x40   : > { %786 = shalt.err (!%p783_p4)  }
  0x41   : > { %243 = dma.hbm_to_vmem [thread:$0]  %s232_s17, 16, %s1139_s20, [#allocation3] }
  0x42   : > { %s255_s1 = scalar_select %p254_p5, %s1141_s29, 0 }
  0x43   : > { %p282_p7 = scmp.gt.s32.totalorder %s1146_s25, 0  ;;  %p624_p8 = scmp.lt.s32.totalorder %s1146_s25, 63 }
  0x44   : > { %s1384_s1 = smov (!%p617_p6, %s255_s1), 63  ;;  %s308_s6 = sadd.s32 3, %s1130_s15 }
  0x45   : > { %s283_s30 = scalar_select %p282_p7, %s1146_s25, 0 }
  0x46   : > { %s622_s11 = sshll.u32 %s1384_s1, 4 }
  0x47   : > { %s259_s21 = scalar_lea.hbm %s1352_s4, %s622_s11 }
  0x48   : > { %s787_s12 = scalar_lea.hbm %s259_s21, 16  ;;  %p790_p11 = scmp.lt.s32.totalorder %s259_s21, %s1352_s4 }
  0x49   : > { %p788_p10 = scmp.ne.s32.totalorder %s259_s21, %s787_s12  ;;  %p791_p5 = scmp.lt.s32.totalorder %s1156_s3, %s787_s12 }
  0x4b   : > { %p792_p12 = por %p791_p5, %p790_p11 }
  0x4d   : > { %p793_p0 = pnand %p792_p12, %p788_p10 }
  0x4f   : > { %796 = shalt.err (!%p793_p0)  }
  0x50   : > { %s797_s29 = scalar_lea.vmem %s1144_s8, 16  ;;  %p802_p1 = scmp.lt.s32.totalorder %s1144_s8, %s1139_s20 }
  0x51   : > { %p798_p6 = scmp.ne.s32.totalorder %s1144_s8, %s797_s29  ;;  %p803_p2 = scmp.lt.s32.totalorder %s1165_s13, %s797_s29 }
  0x53   : > { %p804_p3 = por %p803_p2, %p802_p1 }
  0x55   : > { %p805_p4 = pnand %p804_p3, %p798_p6 }
  0x57   : > { %808 = shalt.err (!%p805_p4)  }
  0x58   : > { %271 = dma.hbm_to_vmem [thread:$0]  %s259_s21, 16, %s1144_s8, [#allocation3] }
  0x59   : > { %s1386_s30 = smov (!%p624_p8, %s283_s30), 63  ;;  %s1197_s26 = sld [smem:[#allocation5 + %s308_s6]] }
  0x5a   : > { %s629_s17 = sshll.u32 %s1386_s30, 4  ;;  %s1027_s19 = smov [#allocation2 + $0x3]  }
  0x5b   : > { %s287_s18 = scalar_lea.hbm %s1352_s4, %s629_s17  ;;  %s324_s12 = sshll.u32 %s1027_s19, 4  ;;  %s1213_s12 = int_to_ptr.vmem [resolvable:$true] %s324_s12 }
  0x5c   : > { %s809_s16 = scalar_lea.hbm %s287_s18, 16  ;;  %p812_p10 = scmp.lt.s32.totalorder %s287_s18, %s1352_s4 }
  0x5d   : > { %p810_p7 = scmp.ne.s32.totalorder %s287_s18, %s809_s16  ;;  %p813_p11 = scmp.lt.s32.totalorder %s1156_s3, %s809_s16 }
  0x5f   : > { %p814_p5 = por %p813_p11, %p812_p10 }
  0x61   : > { %p815_p12 = pnand %p814_p5, %p810_p7 }
  0x63   : > { %818 = shalt.err (!%p815_p12)  }
  0x64   : > { %s819_s8 = scalar_lea.vmem %s1179_s22, 16  ;;  %p824_p0 = scmp.lt.s32.totalorder %s1179_s22, %s1139_s20 }
  0x65   : > { %p820_p8 = scmp.ne.s32.totalorder %s1179_s22, %s819_s8  ;;  %p825_p6 = scmp.lt.s32.totalorder %s1165_s13, %s819_s8 }
  0x67   : > { %p826_p1 = por %p825_p6, %p824_p0 }
  0x69   : > { %p827_p2 = pnand %p826_p1, %p820_p8 }
  0x6b   : > { %830 = shalt.err (!%p827_p2)  }
  0x6c   : > { %299 = dma.hbm_to_vmem [thread:$0]  %s287_s18, 16, %s1179_s22, [#allocation3] }
  0x6d   : > { %s336_s10 = sadd.s32 4, %s1130_s15  ;;  %p310_p3 = scmp.gt.s32.totalorder %s1197_s26, 0 }
  0x6e   : > { %s1215_s25 = sld [smem:[#allocation5 + %s336_s10]]  ;;  %p631_p4 = scmp.lt.s32.totalorder %s1197_s26, 63 }
  0x6f   : > { %s1028_s30 = smov [#allocation2 + $0x4]   ;;  %s364_s6 = sadd.s32 5, %s1130_s15 }
  0x70   : > { %s352_s21 = sshll.u32 %s1028_s30, 4  ;;  %s1388_s26 = smov (!%p310_p3, %s1197_s26), 0  ;;  %s1224_s21 = int_to_ptr.vmem [resolvable:$true] %s352_s21 }
  0x71   : > { %s1221_s17 = sld [smem:[#allocation5 + %s364_s6]]  ;;  %s1390_s26 = smov (!%p631_p4, %s1388_s26), 63 }
  0x72   : > { %s636_s22 = sshll.u32 %s1390_s26, 4  ;;  %s1029_s19 = smov [#allocation2 + $0x5]  }
  0x73   : > { %s315_s18 = scalar_lea.hbm %s1352_s4, %s636_s22  ;;  %s1230_s16 = sshll.u32 %s1029_s19, 4  ;;  %s381_s16 = int_to_ptr.vmem [resolvable:$true] %s1230_s16 }
  0x74   : > { %p338_p7 = scmp.gt.s32.totalorder %s1215_s25, 0  ;;  %p638_p10 = scmp.lt.s32.totalorder %s1215_s25, 63 }
  0x75   : > { %s831_s29 = scalar_lea.hbm %s315_s18, 16  ;;  %p834_p5 = scmp.lt.s32.totalorder %s315_s18, %s1352_s4 }
  0x76   : > { %p832_p11 = scmp.ne.s32.totalorder %s315_s18, %s831_s29  ;;  %p835_p12 = scmp.lt.s32.totalorder %s1156_s3, %s831_s29 }
  0x78   : > { %p836_p8 = por %p835_p12, %p834_p5 }
  0x7a   : > { %p837_p0 = pnand %p836_p8, %p832_p11 }
  0x7c   : > { %840 = shalt.err (!%p837_p0)  }
  0x7d   : > { %s841_s26 = scalar_lea.vmem %s1213_s12, 16  ;;  %p846_p1 = scmp.lt.s32.totalorder %s1213_s12, %s1139_s20 }
  0x7e   : > { %p842_p6 = scmp.ne.s32.totalorder %s1213_s12, %s841_s26  ;;  %p847_p2 = scmp.lt.s32.totalorder %s1165_s13, %s841_s26 }
  0x80   : > { %p848_p3 = por %p847_p2, %p846_p1 }
  0x82   : > { %p849_p4 = pnand %p848_p3, %p842_p6 }
  0x84   : > { %852 = shalt.err (!%p849_p4)  }
  0x85   : > { %327 = dma.hbm_to_vmem [thread:$0]  %s315_s18, 16, %s1213_s12, [#allocation3] }
  0x86   : > { %s339_s30 = scalar_select %p338_p7, %s1215_s25, 0 }
  0x87   : > { %p366_p11 = scmp.gt.s32.totalorder %s1221_s17, 0  ;;  %p645_p5 = scmp.lt.s32.totalorder %s1221_s17, 63 }
  0x88   : > { %s1392_s30 = smov (!%p638_p10, %s339_s30), 63  ;;  %s392_s1 = sadd.s32 6, %s1130_s15 }
  0x89   : > { %s367_s6 = scalar_select %p366_p11, %s1221_s17, 0 }
  0x8a   : > { %s643_s22 = sshll.u32 %s1392_s30, 4  ;;  %s1254_s8 = sld [smem:[#allocation5 + %s392_s1]] }
  0x8b   : > { %s343_s29 = scalar_lea.hbm %s1352_s4, %s643_s22 }
  0x8c   : > { %s853_s10 = scalar_lea.hbm %s343_s29, 16  ;;  %p856_p8 = scmp.lt.s32.totalorder %s343_s29, %s1352_s4 }
  0x8d   : > { %p854_p12 = scmp.ne.s32.totalorder %s343_s29, %s853_s10  ;;  %p857_p7 = scmp.lt.s32.totalorder %s1156_s3, %s853_s10 }
  0x8f   : > { %p858_p0 = por %p857_p7, %p856_p8 }
  0x91   : > { %p859_p6 = pnand %p858_p0, %p854_p12 }
  0x93   : > { %862 = shalt.err (!%p859_p6)  }
  0x94   : > { %s863_s12 = scalar_lea.vmem %s1224_s21, 16  ;;  %p868_p1 = scmp.lt.s32.totalorder %s1224_s21, %s1139_s20 }
  0x95   : > { %p864_p10 = scmp.ne.s32.totalorder %s1224_s21, %s863_s12  ;;  %p869_p2 = scmp.lt.s32.totalorder %s1165_s13, %s863_s12 }
  0x97   : > { %p870_p3 = por %p869_p2, %p868_p1 }
  0x99   : > { %p871_p4 = pnand %p870_p3, %p864_p10 }
  0x9b   : > { %874 = shalt.err (!%p871_p4)  }
  0x9c   : > { %355 = dma.hbm_to_vmem [thread:$0]  %s343_s29, 16, %s1224_s21, [#allocation3] }
  0x9d   : > { %s1394_s6 = smov (!%p645_p5, %s367_s6), 63  ;;  %s420_s22 = sadd.s32 7, %s1130_s15 }
  0x9e   : > { %s650_s0 = sshll.u32 %s1394_s6, 4 }
  0x9f   : > { %s371_s30 = scalar_lea.hbm %s1352_s4, %s650_s0 }
  0xa0   : > { %s875_s1 = scalar_lea.hbm %s371_s30, 16  ;;  %p878_p12 = scmp.lt.s32.totalorder %s371_s30, %s1352_s4 }
  0xa1   : > { %p876_p11 = scmp.ne.s32.totalorder %s371_s30, %s875_s1  ;;  %p879_p8 = scmp.lt.s32.totalorder %s1156_s3, %s875_s1 }
  0xa3   : > { %p880_p7 = por %p879_p8, %p878_p12 }
  0xa5   : > { %p881_p0 = pnand %p880_p7, %p876_p11 }
  0xa7   : > { %884 = shalt.err (!%p881_p0)  }
  0xa8   : > { %s885_s21 = scalar_lea.vmem %s381_s16, 16  ;;  %p890_p6 = scmp.lt.s32.totalorder %s381_s16, %s1139_s20 }
  0xa9   : > { %p886_p5 = scmp.ne.s32.totalorder %s381_s16, %s885_s21  ;;  %p891_p10 = scmp.lt.s32.totalorder %s1165_s13, %s885_s21 }
  0xab   : > { %p892_p1 = por %p891_p10, %p890_p6 }
  0xad   : > { %p893_p2 = pnand %p892_p1, %p886_p5 }
  0xaf   : > { %896 = shalt.err (!%p893_p2)  }
  0xb0   : > { %383 = dma.hbm_to_vmem [thread:$0]  %s371_s30, 16, %s381_s16, [#allocation3] }
  0xb1   : > { %p394_p3 = scmp.gt.s32.totalorder %s1254_s8, 0  ;;  %p652_p4 = scmp.lt.s32.totalorder %s1254_s8, 63 }
  0xb2   : > { %s1030_s17 = smov [#allocation2 + $0x6]   ;;  %s421_s29 = sld [smem:[#allocation5 + %s420_s22]] }
  0xb3   : > { %s408_s6 = sshll.u32 %s1030_s17, 4  ;;  %s1396_s8 = smov (!%p394_p3, %s1254_s8), 0  ;;  %s409_s6 = int_to_ptr.vmem [resolvable:$true] %s408_s6 }
  0xb4   : > { %s1398_s8 = smov (!%p652_p4, %s1396_s8), 63 }
  0xb5   : > { %s657_s10 = sshll.u32 %s1398_s8, 4 }
  0xb6   : > { %s399_s0 = scalar_lea.hbm %s1352_s4, %s657_s10 }
  0xb7   : > { %s897_s25 = scalar_lea.hbm %s399_s0, 16  ;;  %p900_p8 = scmp.lt.s32.totalorder %s399_s0, %s1352_s4 }
  0xb8   : > { %p422_p11 = scmp.gt.s32.totalorder %s421_s29, 0  ;;  %p898_p12 = scmp.ne.s32.totalorder %s399_s0, %s897_s25 }
  0xb9   : > { %p901_p7 = scmp.lt.s32.totalorder %s1156_s3, %s897_s25 }
  0xbb   : > { %p902_p0 = por %p901_p7, %p900_p8 }
  0xbd   : > { %p903_p5 = pnand %p902_p0, %p898_p12 }
  0xbf   : > { %906 = shalt.err (!%p903_p5)  }
  0xc0   : > { %s907_s30 = scalar_lea.vmem %s409_s6, 16  ;;  %p912_p10 = scmp.lt.s32.totalorder %s409_s6, %s1139_s20 }
  0xc1   : > { %p908_p6 = scmp.ne.s32.totalorder %s409_s6, %s907_s30  ;;  %p913_p1 = scmp.lt.s32.totalorder %s1165_s13, %s907_s30 }
  0xc3   : > { %p914_p2 = por %p913_p1, %p912_p10 }
  0xc5   : > { %p915_p3 = pnand %p914_p2, %p908_p6 }
  0xc7   : > { %918 = shalt.err (!%p915_p3)  }
  0xc8   : > { %411 = dma.hbm_to_vmem [thread:$0]  %s399_s0, 16, %s409_s6, [#allocation3] }
  0xc9   : > { %s423_s8 = scalar_select %p422_p11, %s421_s29, 0 }
  0xca   : > { %p659_p4 = scmp.lt.s32.totalorder %s421_s29, 63  ;;  %s1031_s22 = smov [#allocation2 + $0x7]  }
  0xcb   : > { %s436_s1 = sshll.u32 %s1031_s22, 4  ;;  %s437_s1 = int_to_ptr.vmem [resolvable:$true] %s436_s1 }
  0xcc   : > { %s1400_s8 = smov (!%p659_p4, %s423_s8), 63 }
  0xcd   : > { %s664_s11 = sshll.u32 %s1400_s8, 4 }
  0xce   : > { %s427_s17 = scalar_lea.hbm %s1352_s4, %s664_s11 }
  0xcf   : > { %s919_s10 = scalar_lea.hbm %s427_s17, 16  ;;  %p922_p8 = scmp.lt.s32.totalorder %s427_s17, %s1352_s4 }
  0xd0   : > { %p920_p12 = scmp.ne.s32.totalorder %s427_s17, %s919_s10  ;;  %p923_p7 = scmp.lt.s32.totalorder %s1156_s3, %s919_s10 }
  0xd2   : > { %p924_p0 = por %p923_p7, %p922_p8 }
  0xd4   : > { %p925_p5 = pnand %p924_p0, %p920_p12 }
  0xd6   : > { %928 = shalt.err (!%p925_p5)  }
  0xd7   : > { %s929_s6 = scalar_lea.vmem %s437_s1, 16  ;;  %p934_p6 = scmp.lt.s32.totalorder %s437_s1, %s1139_s20 }
  0xd8   : > { %p930_p11 = scmp.ne.s32.totalorder %s437_s1, %s929_s6  ;;  %p935_p10 = scmp.lt.s32.totalorder %s1165_s13, %s929_s6 }
  0xda   : > { %p936_p1 = por %p935_p10, %p934_p6 }
  0xdc   : > { %p937_p2 = pnand %p936_p1, %p930_p11 }
  0xde   : > { %940 = shalt.err (!%p937_p2)  }
  0xdf   : > { %439 = dma.hbm_to_vmem [thread:$0]  %s427_s17, 16, %s437_s1, [#allocation3] }
  0xe0   : > { %s204_s29 = scalar_lea.vmem [#allocation6], %s1128_s14 }
  0xe1   : > { %993 = dma.done.wait [#allocation3], 128 }
  0xe2   : > { %994 = vsyncadd [#allocation3], 4294967168  ;;  %v1032_v1 = vmov 0   ;;  %v446_v2 = vld [vmem:[%s1137_s28] sm:$0xff]  ;;  %v453_v4 = vlaneseq  ;;  %s479_s14 = sshll.u32 %s204_s29, 4  ;;  %s477_s0 = scalar_lea.hbm %s1353_s5, %s1130_s15  ;;  %s480_s14 = int_to_ptr.vmem [resolvable:$true] %s479_s14 }
  0xe3   : > { %752 = vset.pattern.permute.xlu0 %v1032_v1  ;;  %vm447_vm0 = vcmp.gt.s32.totalorder %v446_v2, 0  ;;  %v443_v8 = vld [vmem:[#allocation2] sm:$0xff]  ;;  %s1368_s25 = sand.u32 1, %s1005_s24   ;;  %s941_s18 = scalar_lea.vmem %s480_s14, 128 }
  0xe4   : > { %v448_v3 = vsel %vm447_vm0, 1, %v1032_v1  ;;  %v454_v5 = vshrl.u32 %v453_v4, 7  ;;  %v444_v9 = vld [vmem:[%s1350_s2] sm:$0xff]  ;;  %s465_s16 = scalar_lea.sflag [#allocation7], %s1368_s25  ;;  %p942_p3 = scmp.ne.s32.totalorder %s480_s14, %s941_s18 }
  0xe5   : > { %450 = vperm.xlu0 %752, %v448_v3   ;;  %v445_v12 = vadd.f32 %v444_v9, %v443_v8  ;;  %s1033_s30 = smov [#allocation6]  }
  0xe6   : > { %v455_v6 = vsub.s32 1, %v454_v5  ;;  %v459_v7 = vsub.s32 0, %v454_v5  ;;  %p943_p4 = pnand %p942_p3, %p1105_p9  ;;  %s945_s8 = sshll.u32 %s1033_s30, 4  ;;  %s946_s8 = int_to_ptr.vmem [resolvable:$false] %s945_s8 }
  0xe7   : > { %s947_s22 = scalar_lea.vmem %s946_s8, 256  ;;  %p948_p8 = scmp.lt.s32.totalorder %s480_s14, %s946_s8 }
  0xe8   : > { %v456_v10 = vrot.slane %v1124_v0, %v455_v6  ;;  %v460_v11 = vrot.slane %v1124_v0, %v459_v7  ;;  %p944_p12 = pneg %p943_p4  ;;  %p949_p7 = scmp.lt.s32.totalorder %s947_s22, %s941_s18 }
  0xea   : > { %p950_p0 = por %p949_p7, %p948_p8 }
  0xec   : > { %p951_p5 = pnand %p950_p0, %p944_p12 }
 0x160   : > { %v451_v13 = vpop.permute.xlu0 %450 }
 0x161   : > { %vm452_vm1 = vcmp.eq.s32.totalorder %v451_v13, 1 }
 0x162   : > { %v461_v14 = vsel %vm452_vm1, %v456_v10, %v460_v11 }
 0x163   : > { %v462_v15 = vadd.f32 %v461_v14, %v445_v12 }
 0x165   : > { %463 = vst [vmem:[%s204_s29] sm:$0xff] %v462_v15 }
 0x166   : > { %954 = shalt.err (!%p951_p5)
}
 0x167   : > { %s955_s1 = scalar_lea.hbm %s477_s0, 128  ;;  %s959_s19 = scalar_lea.hbm %s1353_s5, 256 }
 0x168   : > { %p956_p11 = scmp.ne.s32.totalorder %s477_s0, %s955_s1  ;;  %p960_p1 = scmp.lt.s32.totalorder %s477_s0, %s1353_s5 }
 0x169   : > { %p961_p2 = scmp.lt.s32.totalorder %s959_s19, %s955_s1 }
 0x16a   : > { %p957_p6 = pnand %p956_p11, %p1105_p9 }
 0x16b   : > { %p962_p3 = por %p961_p2, %p960_p1 }
 0x16c   : > { %p958_p10 = pneg %p957_p6 }
 0x16e   : > { %p963_p4 = pnand %p962_p3, %p958_p10 }
 0x170   : > { %966 = shalt.err (!%p963_p4)
}
 0x171   : > { %687 = dma.vmem_to_hbm [thread:$0]  (%p1105_p9), %s480_s14, 128, %s477_s0, %s465_s16  }
 0x172 PF: > { %p693_p12 = scmp.ge.s32.totalorder %s1021_s27, 2  ;;  %s491_s10 = sand.u32 1, %s1001_s23  }
 0x173   : > { %s492_s26 = scalar_lea.sflag [#allocation7], %s491_s10 }
 0x174   : > { %p690_p8 = pnand %p693_p12, %p1112_p13 }
 0x176   : > { %p691_p7 = pneg %p690_p8 }
 0x178   : > { %996 = dma.done.wait (%p691_p7), %s492_s26, 128  }
 0x179   : > { %998 = vsyncadd (%p691_p7), %s492_s26, 4294967168  ;;  %s24_s27 = sadd.s32 1, %s1021_s27   ;;  %s1369_s12 = sld [smem:[#allocation29_spill]] }
 0x17a   : > { %p21_p0 = scmp.ge.s32.totalorder %s24_s27, 4   ;;  %s1370_s0 = sld [smem:[#allocation32_spill]] }
 0x17b   : > { %s1371_s25 = sld [smem:[#allocation30_spill]]  ;;  %s1373_s23 = smov %s1005_s24 }
 0x17c   : > { %s1372_s26 = sld [smem:[#allocation31_spill]]  ;;  %23 = sbr.rel (!%p21_p0) target bundleno = 20 (0x14), region = 118 }
 0x17f   : > { %s1374_s24 = smov %s1369_s12 }
 0x181   :  { %497 = vsyncpa [#allocation7], 1 }
 0x182   :  { %499 = vsyncpa [#allocation7 + $0x1], 1 }
 0x183   :  { %500 = vsyncmov [#allocation3] }
 0x186   :  { %s501_s7 = vpop.sfrf %500 }
 0x187   :  { %p669_p9 = scmp.ne.s32.totalorder %s501_s7, 0 }
 0x189   :  { %505 = shalt.err (%p669_p9)  }
 0x18a   :  { %507 = vsyncmov [#allocation3 + $0x1] }
 0x18d   :  { %s508_s9 = vpop.sfrf %507 }
 0x18e   :  { %p670_p13 = scmp.ne.s32.totalorder %s508_s9, 0 }
 0x190   :  { %512 = shalt.err (%p670_p13)  }

</bundles_post_ra>
